<compile_context>
chip_gen: v7x
topology: tpu7x:2x2x1
jax: 0.10.0
libtpu: 0.0.40
codegen_flags: <defaults>
</compile_context>

<pallas_src>
import jax
import jax.numpy as jnp
from jax import lax
from jax.experimental import pallas as pl
from jax.experimental.pallas import tpu as pltpu

EPS = 1e-5

# (phase, delta) -> transposed-conv kernel tap index (kernel=4, stride=2, pad=1):
#   output row 2*h + py gathers input row h+dh with tap kh where
#   py=0: dh=0 -> kh=1, dh=-1 -> kh=3 ;  py=1: dh=0 -> kh=2, dh=+1 -> kh=0
_KH_FOR = {(0, 0): 1, (0, -1): 3, (1, 0): 2, (1, 1): 0}


def _pack_weights(w):
    """PyTorch ConvTranspose2d weight (Cin, Cout, 4, 4) -> (9, Cin, 4*Cout).

    Entry s = (dh+1)*3 + (dw+1) holds, stacked along the output dim, the taps
    feeding each of the 4 sub-pixel phases p = py*2 + px (zeros where the
    spatial shift (dh, dw) does not contribute to that phase).
    """
    Cin, Cout = w.shape[0], w.shape[1]
    zero = jnp.zeros((Cin, Cout), w.dtype)
    blocks = []
    for dh in (-1, 0, 1):
        for dw in (-1, 0, 1):
            cols = []
            for py in (0, 1):
                for px in (0, 1):
                    kh = _KH_FOR.get((py, dh))
                    kw = _KH_FOR.get((px, dw))
                    cols.append(zero if (kh is None or kw is None)
                                else w[:, :, kh, kw])          # (Cin, Cout)
            blocks.append(jnp.concatenate(cols, axis=1))       # (Cin, 4*Cout)
    return jnp.stack(blocks, axis=0)                           # (9, Cin, 4*Cout)


def _bn_stats_kernel(x_ref, stats_ref):
    # x_ref:     (1, H, W, Cin) tile of one batch element
    # stats_ref: (2, Cin) resident accumulator: row 0 = sum(x), row 1 = sum(x*x)
    @pl.when(pl.program_id(0) == 0)
    def _init():
        stats_ref[...] = jnp.zeros_like(stats_ref)

    _, H, W, Cin = x_ref.shape
    x = x_ref[0].astype(jnp.float32).reshape(H * W, Cin)
    s = jnp.sum(x, axis=0, keepdims=True)                      # (1, Cin)
    q = jnp.sum(x * x, axis=0, keepdims=True)                  # (1, Cin)
    stats_ref[...] = stats_ref[...] + jnp.concatenate([s, q], axis=0)


def _bn_deconv_kernel(x_ref, scale_ref, shift_ref, w_ref, b_ref, o_ref):
    # x_ref:     (1, H, W, Cin)        one batch element (f32)
    # scale_ref: (1, Cin)  shift_ref: (1, Cin)   folded BN affine (f32)
    # w_ref:     (9, Cin, 4*Cout)      packed per-shift taps (bf16)
    # b_ref:     (1, 4*Cout)           bias tiled over the 4 phases (f32)
    # o_ref:     (1, H, W, 4*Cout)     phase-fused, lane-dense output
    _, H, W, Cin = x_ref.shape
    C4 = o_ref.shape[-1]
    HW = H * W
    PAD = W + 1   # zero rows above/below the flattened tile -> +/-1-row halo for free

    # BatchNorm apply (f32 on the VPU), flattened so the last dim feeds the MXU K.
    x = x_ref[0].astype(jnp.float32).reshape(HW, Cin)
    xn = x * scale_ref[...] + shift_ref[...]                    # (HW, Cin)

    # Minimal row padding: a spatial shift (dh, dw) becomes a static row-slice
    # at offset dh*W + dw; only column wrap-around needs a mask.
    zpad = jnp.zeros((PAD, Cin), jnp.float32)
    xp = jnp.concatenate([zpad, xn, zpad], axis=0)              # (HW + 2*PAD, Cin)

    ww = lax.broadcasted_iota(jnp.int32, (HW, 1), 0) % W        # column index per row
    col_ok = {-1: ww >= 1, 0: None, 1: ww < (W - 1)}

    acc = jnp.zeros((HW, C4), jnp.float32)
    s_idx = 0
    for dh in (-1, 0, 1):
        for dw in (-1, 0, 1):
            start = PAD + dh * W + dw
            lhs = xp[start:start + HW, :]                       # shifted view (lazy copy)
            m = col_ok[dw]
            if m is not None:
                lhs = jnp.where(m, lhs, 0.0)                    # mask column wrap
            acc += jnp.dot(lhs.astype(jnp.bfloat16), w_ref[s_idx],
                           preferred_element_type=jnp.float32)  # bf16 MXU, f32 acc
            s_idx += 1

    y = jnp.maximum(acc + b_ref[...], 0.0)                      # bias + ReLU
    o_ref[0] = y.reshape(H, W, C4)


def trans_up(x_nchw, gamma, beta, w, bias):
    """TransUp forward. x_nchw: (N, Cin, H, W); w: ConvTranspose2d layout (Cin, Cout, 4, 4)."""
    N, Cin, H, W = x_nchw.shape
    Cout = w.shape[1]
    C4 = 4 * Cout

    x = jnp.transpose(x_nchw, (0, 2, 3, 1)).astype(jnp.float32)     # NCHW -> NHWC

    # ---- pass 1: BatchNorm batch statistics (training mode, biased variance) ----
    stats = pl.pallas_call(
        _bn_stats_kernel,
        out_shape=jax.ShapeDtypeStruct((2, Cin), jnp.float32),
        grid_spec=pltpu.PrefetchScalarGridSpec(
            num_scalar_prefetch=0,
            grid=(N,),
            in_specs=[pl.BlockSpec((1, H, W, Cin), lambda n: (n, 0, 0, 0))],
            out_specs=pl.BlockSpec((2, Cin), lambda n: (0, 0)),
        ),
        compiler_params=pltpu.CompilerParams(
            dimension_semantics=("arbitrary",),
            vmem_limit_bytes=32 * 1024 * 1024,
        ),
    )(x)

    cnt = float(N * H * W)
    mean = stats[0] / cnt
    var = jnp.maximum(stats[1] / cnt - mean * mean, 0.0)            # single-pass E[x^2]-mean^2
    scale = gamma.astype(jnp.float32) * lax.rsqrt(var + EPS)
    shift = beta.astype(jnp.float32) - mean * scale

    w_pack = _pack_weights(w.astype(jnp.float32)).astype(jnp.bfloat16)   # (9, Cin, 4*Cout)
    bias4 = jnp.tile(bias.astype(jnp.float32).reshape(1, Cout), (1, 4))  # (1, 4*Cout)

    # ---- pass 2: BN apply + transposed conv + ReLU, gridded over the batch ----
    out = pl.pallas_call(
        _bn_deconv_kernel,
        out_shape=jax.ShapeDtypeStruct((N, H, W, C4), jnp.float32),
        grid_spec=pltpu.PrefetchScalarGridSpec(
            num_scalar_prefetch=0,
            grid=(N,),
            in_specs=[
                pl.BlockSpec((1, H, W, Cin), lambda n: (n, 0, 0, 0)),
                pl.BlockSpec((1, Cin), lambda n: (0, 0)),
                pl.BlockSpec((1, Cin), lambda n: (0, 0)),
                pl.BlockSpec((9, Cin, C4), lambda n: (0, 0, 0)),
                pl.BlockSpec((1, C4), lambda n: (0, 0)),
            ],
            out_specs=pl.BlockSpec((1, H, W, C4), lambda n: (n, 0, 0, 0)),
        ),
        compiler_params=pltpu.CompilerParams(
            dimension_semantics=("parallel",),          # megacore split on v7x
            vmem_limit_bytes=32 * 1024 * 1024,
        ),
    )(x, scale.reshape(1, Cin), shift.reshape(1, Cin), w_pack, bias4)

    # Phase-fused NHWC(4*Cout) -> NCHW in a single transpose:
    # out[n, h, w, (py*2+px)*Cout + co] == y[n, co, 2h+py, 2w+px]
    out = out.reshape(N, H, W, 2, 2, Cout)
    y = jnp.transpose(out, (0, 5, 1, 3, 2, 4)).reshape(N, Cout, 2 * H, 2 * W)
    return y


def trans_up_ref(x_nchw, gamma, beta, w, bias):
    """Pure-JAX f32 reference (BN training stats + transposed conv via lhs-dilated conv)."""
    x = x_nchw.astype(jnp.float32)
    mean = jnp.mean(x, axis=(0, 2, 3), keepdims=True)
    var = jnp.mean((x - mean) ** 2, axis=(0, 2, 3), keepdims=True)
    xn = (x - mean) * lax.rsqrt(var + EPS) * gamma.reshape(1, -1, 1, 1) + beta.reshape(1, -1, 1, 1)
    w_flip = jnp.transpose(w, (1, 0, 2, 3))[:, :, ::-1, ::-1]        # (Cout, Cin, 4, 4)
    y = lax.conv_general_dilated(xn, w_flip, window_strides=(1, 1),
                                 padding=((2, 2), (2, 2)), lhs_dilation=(2, 2),
                                 dimension_numbers=("NCHW", "OIHW", "NCHW"),
                                 precision=lax.Precision.HIGHEST)
    return jnp.maximum(y + bias.reshape(1, -1, 1, 1), 0.0)


if __name__ == "__main__":
    N, Cin, Cout, H, W = 2, 4, 8, 16, 16
    key = jax.random.PRNGKey(0)
    k1, k2, k3, k4, k5 = jax.random.split(key, 5)

    x = jax.random.normal(k1, (N, Cin, H, W), jnp.float32)
    gamma = 1.0 + 0.5 * jax.random.normal(k2, (Cin,), jnp.float32)
    beta = 0.1 * jax.random.normal(k3, (Cin,), jnp.float32)
    weight = 0.1 * jax.random.normal(k4, (Cin, Cout, 4, 4), jnp.float32)
    bias = 0.1 * jax.random.normal(k5, (Cout,), jnp.float32)

    out = jax.block_until_ready(trans_up(x, gamma, beta, weight, bias))
    ref = jax.block_until_ready(trans_up_ref(x, gamma, beta, weight, bias))

    assert out.shape == (N, Cout, 2 * H, 2 * W), out.shape
    # Tolerance sized for bfloat16 MXU operands (f32 accumulation) vs. an f32 reference.
    max_err = float(jnp.max(jnp.abs(out - ref)))
    assert jnp.allclose(out, ref, atol=3e-2, rtol=3e-2), max_err
    print("KERNEL_OK")
</pallas_src>

<mosaic_0001>
module attributes {stable_mosaic.version = 11 : i64} {
  func.func @_bn_stats_kernel(%arg0: i32, %arg1: memref<1x16x16x4xf32, #tpu.memory_space<vmem>>, %arg2: memref<2x4xf32, #tpu.memory_space<vmem>>) attributes {dimension_semantics = [#tpu.dimension_semantics<arbitrary>], iteration_bounds = array<i64: 2>, scalar_prefetch = 0 : i64, scratch_operands = 0 : i64, tpu.core_type = #tpu.core_type<tc>, window_params = [{transform_indices = @transform_0, window_bounds = array<i64: 1, 16, 16, 4>}, {pipeline_mode = #tpu.pipeline_mode<synchronous>, transform_indices = @transform_1, window_bounds = array<i64: 2, 4>}]} {
    %c0_i32 = arith.constant 0 : i32
    %0 = arith.cmpi eq, %arg0, %c0_i32 : i32
    %1 = arith.extui %0 : i1 to i32
    %c0_i32_0 = arith.constant 0 : i32
    %2 = arith.cmpi ne, %1, %c0_i32_0 : i32
    scf.if %2 {
      %cst_9 = arith.constant 0.000000e+00 : f32
      %15 = vector.broadcast %cst_9 : f32 to vector<2x4xf32>
      %c0_10 = arith.constant 0 : index
      %c0_11 = arith.constant 0 : index
      %16 = vector.load %arg2[%c0_10, %c0_11] : memref<2x4xf32, #tpu.memory_space<vmem>>, vector<2x4xf32>
      tpu.vector_store %arg2[%c0_10, %c0_11], %15 {strides = array<i32>} : memref<2x4xf32, #tpu.memory_space<vmem>>, vector<2x4xf32>,
    } else {
    }
    %c0 = arith.constant 0 : index
    %c0_1 = arith.constant 0 : index
    %c0_2 = arith.constant 0 : index
    %c0_3 = arith.constant 0 : index
    %3 = vector.load %arg1[%c0, %c0_1, %c0_2, %c0_3] : memref<1x16x16x4xf32, #tpu.memory_space<vmem>>, vector<1x16x16x4xf32>
    %4 = vector.shape_cast %3 : vector<1x16x16x4xf32> to vector<16x16x4xf32>
    %5 = vector.shape_cast %4 : vector<16x16x4xf32> to vector<256x4xf32>
    %cst = arith.constant dense<0.000000e+00> : vector<4xf32>
    %6 = vector.multi_reduction <add>, %5, %cst [0] : vector<256x4xf32> to vector<4xf32>
    %7 = vector.shape_cast %6 : vector<4xf32> to vector<1x4xf32>
    %8 = arith.mulf %5, %5 : vector<256x4xf32>
    %cst_4 = arith.constant dense<0.000000e+00> : vector<4xf32>
    %9 = vector.multi_reduction <add>, %8, %cst_4 [0] : vector<256x4xf32> to vector<4xf32>
    %10 = vector.shape_cast %9 : vector<4xf32> to vector<1x4xf32>
    %c0_5 = arith.constant 0 : index
    %c0_6 = arith.constant 0 : index
    %11 = vector.load %arg2[%c0_5, %c0_6] : memref<2x4xf32, #tpu.memory_space<vmem>>, vector<2x4xf32>
    %12 = tpu.concatenate %7, %10 in 0 : vector<1x4xf32>, vector<1x4xf32> -> vector<2x4xf32>
    %13 = arith.addf %11, %12 : vector<2x4xf32>
    %c0_7 = arith.constant 0 : index
    %c0_8 = arith.constant 0 : index
    %14 = vector.load %arg2[%c0_7, %c0_8] : memref<2x4xf32, #tpu.memory_space<vmem>>, vector<2x4xf32>
    tpu.vector_store %arg2[%c0_7, %c0_8], %13 {strides = array<i32>} : memref<2x4xf32, #tpu.memory_space<vmem>>, vector<2x4xf32>,
    return
  }
  func.func @transform_0(%arg0: i32) -> (i32, i32, i32, i32) {
    %c0_i32 = arith.constant 0 : i32
    %c0_i32_0 = arith.constant 0 : i32
    %c0_i32_1 = arith.constant 0 : i32
    %c0_i32_2 = arith.constant 0 : i32
    return %arg0, %c0_i32, %c0_i32_0, %c0_i32_1 : i32, i32, i32, i32
  }
  func.func @transform_1(%arg0: i32) -> (i32, i32) {
    %c0_i32 = arith.constant 0 : i32
    %c0_i32_0 = arith.constant 0 : i32
    %c0_i32_1 = arith.constant 0 : i32
    return %c0_i32, %c0_i32_0 : i32, i32
  }
}

</mosaic_0001>

<bundles_post_ra>
// kernel: tpu_custom_call.1
= control target key start
LH: loop header
LB: loop body
LE: loop exit
PB: predicated region body
PF: predicated region fallthrough
CT: control target
= control target key end

     0   :  { %6 = vsyncpa [#allocation3], 0  ;;  %s442_s6 = smov 0   ;;  %s582_s0 = inlined_call_operand.vmem [shape: f32[2,16,16,4], index: 0, kind: input, shape index: {}]   ;;  %s583_s1 = inlined_call_operand.hbm [shape: f32[2,4], index: 1, kind: output, shape index: {}]  }
   0x1 LB: > { %s448_s7 = sadd.s32 4294967295, %s428_s6   ;;  %p367_p0 = scmp.ge.s32.totalorder %s428_s6, 1  ;;  %s428_s6 = sphi %s442_s6, %s12_s6  }
   0x2   : > { %p83_p1 = scmp.lt.s32.totalorder %s428_s6, 3 }
   0x4   : > { %p84_p2 = pnand %p367_p0, %p83_p1 }
   0x5   : > { %p98_p3 = scmp.lt.s32.totalorder (!%p84_p2), %s448_s7, 1  ;;  %p370_p4 = scmp.ne.s32.totalorder (!%p84_p2), %s448_s7, 0 }
   0x6   : > { %87 = sbr.rel (%p84_p2) target bundleno = 120 (0x78), region = 24 }
   0xd   : > { %s99_s8 = scalar_select %p98_p3, %s448_s7, 1 }
   0xe   : > { %106 = sbr.rel (%p370_p4) target bundleno = 21 (0x15), region = 28  ;;  %vm107_vm0 = vcmask (!%p370_p4), 25600   ;;  %v430_v0 = vmov (!%p370_p4), 0.0  }
   0xf   : > { %s375_s9 = sshll.u32 %s99_s8, 8  ;;  %108 = vst.msk [vmem:[#allocation2] sm:$0x3] (!%p370_p4), %vm107_vm0, %v430_v0 }
  0x10   : > { %s457_s12 = scalar_lea.vmem %s582_s0, %s375_s9 }
  0x15 PF: > { %v109_v1 = vld [vmem:[%s457_s12] sm:$0xff]  ;;  %v110_v2 = vld [vmem:[%s457_s12 + $0x8] sm:$0xff]  ;;  %v111_v3 = vld [vmem:[%s457_s12 + $0x10] sm:$0xff]  ;;  %vm141_vm1 = vcmask 31744   ;;  %vm313_vm2 = vcmask 1040384   ;;  %s431_s13 = smov [#allocation2]  }
  0x16   : > { %v142_v4 = vsel %vm141_vm1, %v109_v1, 0.0  ;;  %v143_v5 = vsel %vm141_vm1, %v110_v2, 0.0  ;;  %v145_v6 = vsel %vm141_vm1, %v111_v3, 0.0  ;;  %v112_v7 = vld [vmem:[%s457_s12 + $0x18] sm:$0xff]  ;;  %v113_v10 = vld [vmem:[%s457_s12 + $0x20] sm:$0xff]  ;;  %v114_v13 = vld [vmem:[%s457_s12 + $0x28] sm:$0xff]  ;;  %v211_v28 = vmul.f32 %v109_v1, %v109_v1 }
  0x17   : > { %v144_v8 = vadd.f32 %v143_v5, %v142_v4  ;;  %v147_v9 = vsel %vm141_vm1, %v112_v7, 0.0  ;;  %v149_v12 = vsel %vm141_vm1, %v113_v10, 0.0  ;;  %v151_v15 = vsel %vm141_vm1, %v114_v13, 0.0  ;;  %v115_v16 = vld [vmem:[%s457_s12 + $0x30] sm:$0xff]  ;;  %v116_v19 = vld [vmem:[%s457_s12 + $0x38] sm:$0xff]  ;;  %v117_v22 = vld [vmem:[%s457_s12 + $0x40] sm:$0xff] }
  0x18   : > { %v153_v18 = vsel %vm141_vm1, %v115_v16, 0.0  ;;  %v155_v21 = vsel %vm141_vm1, %v116_v19, 0.0  ;;  %v157_v24 = vsel %vm141_vm1, %v117_v22, 0.0  ;;  %v118_v25 = vld [vmem:[%s457_s12 + $0x48] sm:$0xff]  ;;  %v212_v29 = vmul.f32 %v110_v2, %v110_v2  ;;  %v119_v31 = vld [vmem:[%s457_s12 + $0x50] sm:$0xff]  ;;  %v120_v33 = vld [vmem:[%s457_s12 + $0x58] sm:$0xff] }
  0x19   : > { %v146_v11 = vadd.f32 %v145_v6, %v144_v8  ;;  %v159_v27 = vsel %vm141_vm1, %v118_v25, 0.0  ;;  %v213_v30 = vmul.f32 %v111_v3, %v111_v3  ;;  %v161_v34 = vsel %vm141_vm1, %v119_v31, 0.0  ;;  %v121_v42 = vld [vmem:[%s457_s12 + $0x60] sm:$0xff]  ;;  %v122_v48 = vld [vmem:[%s457_s12 + $0x68] sm:$0xff]  ;;  %v123_v54 = vld [vmem:[%s457_s12 + $0x70] sm:$0xff]  ;;  %s325_s14 = sshll.u32 %s431_s13, 4  ;;  %s326_s14 = int_to_ptr.vmem [resolvable:$true] %s325_s14 }
  0x1a   : > { %v214_v35 = vmul.f32 %v112_v7, %v112_v7  ;;  %v163_v37 = vsel %vm141_vm1, %v120_v33, 0.0  ;;  %v215_v38 = vmul.f32 %v113_v10, %v113_v10  ;;  %v243_v39 = vsel %vm141_vm1, %v211_v28, 0.0  ;;  %v124_v60 = vld [vmem:[%s457_s12 + $0x78] sm:$0xff]  ;;  %v125_v2 = vld [vmem:[%s457_s12 + $0x80] sm:$0xff]  ;;  %v126_v8 = vld [vmem:[%s457_s12 + $0x88] sm:$0xff]  ;;  %p380_p5 = scmp.eq.s32.totalorder %s448_s7, 1  ;;  %p399_p9 = scmp.lt.s32.totalorder %s326_s14, %s326_s14 }
  0x1b   : > { %v148_v14 = vadd.f32 %v147_v9, %v146_v11  ;;  %v244_v40 = vsel %vm141_vm1, %v212_v29, 0.0  ;;  %v246_v41 = vsel %vm141_vm1, %v213_v30, 0.0  ;;  %v165_v45 = vsel %vm141_vm1, %v121_v42, 0.0  ;;  %s392_s15 = scalar_lea.vmem %s326_s14, 32 }
  0x1c   : > { %v245_v44 = vadd.f32 %v244_v40, %v243_v39  ;;  %v216_v46 = vmul.f32 %v114_v13, %v114_v13  ;;  %v248_v47 = vsel %vm141_vm1, %v214_v35, 0.0  ;;  %v167_v51 = vsel %vm141_vm1, %v122_v48, 0.0  ;;  %p393_p6 = scmp.ne.s32.totalorder %s326_s14, %s392_s15  ;;  %p400_p10 = scmp.lt.s32.totalorder %s392_s15, %s392_s15 }
  0x1d   : > { %v150_v17 = vadd.f32 %v149_v12, %v148_v14  ;;  %v217_v52 = vmul.f32 %v115_v16, %v115_v16  ;;  %v250_v53 = vsel %vm141_vm1, %v215_v38, 0.0  ;;  %v169_v57 = vsel %vm141_vm1, %v123_v54, 0.0  ;;  %v127_v14 = vld [vmem:[%s457_s12 + $0x90] sm:$0xff] }
  0x1e   : > { %v247_v50 = vadd.f32 %v246_v41, %v245_v44  ;;  %v218_v58 = vmul.f32 %v116_v19, %v116_v19  ;;  %v252_v59 = vsel %vm141_vm1, %v216_v46, 0.0  ;;  %v171_v63 = vsel %vm141_vm1, %v124_v60, 0.0  ;;  %v131_v38 = vld [vmem:[%s457_s12 + $0xb0] sm:$0xff]  ;;  %v132_v44 = vld [vmem:[%s457_s12 + $0xb8] sm:$0xff]  ;;  %p394_p7 = pnand %p393_p6, %p380_p5  ;;  %p401_p11 = por %p400_p10, %p399_p9 }
  0x1f   : > { %v152_v20 = vadd.f32 %v151_v15, %v150_v17  ;;  %v219_v0 = vmul.f32 %v117_v22, %v117_v22  ;;  %v254_v1 = vsel %vm141_vm1, %v217_v52, 0.0  ;;  %v173_v5 = vsel %vm141_vm1, %v125_v2, 0.0 }
  0x20   : > { %v249_v56 = vadd.f32 %v248_v47, %v247_v50  ;;  %v220_v6 = vmul.f32 %v118_v25, %v118_v25  ;;  %v256_v7 = vsel %vm141_vm1, %v218_v58, 0.0  ;;  %v175_v11 = vsel %vm141_vm1, %v126_v8, 0.0  ;;  %v133_v50 = vld [vmem:[%s457_s12 + $0xc0] sm:$0xff]  ;;  %p395_p8 = pneg %p394_p7 }
  0x21   : > { %v154_v23 = vadd.f32 %v153_v18, %v152_v20  ;;  %v221_v12 = vmul.f32 %v119_v31, %v119_v31  ;;  %v258_v13 = vsel %vm141_vm1, %v219_v0, 0.0  ;;  %v177_v17 = vsel %vm141_vm1, %v127_v14, 0.0  ;;  %v128_v20 = vld [vmem:[%s457_s12 + $0x98] sm:$0xff] }
  0x22   : > { %v251_v62 = vadd.f32 %v250_v53, %v249_v56  ;;  %v222_v18 = vmul.f32 %v120_v33, %v120_v33  ;;  %v260_v19 = vsel %vm141_vm1, %v220_v6, 0.0  ;;  %v224_v30 = vmul.f32 %v122_v48, %v122_v48  ;;  %v134_v56 = vld [vmem:[%s457_s12 + $0xc8] sm:$0xff]  ;;  %p402_p12 = pnand %p401_p11, %p395_p8 }
  0x23   : > { %v156_v26 = vadd.f32 %v155_v21, %v154_v23  ;;  %v179_v23 = vsel %vm141_vm1, %v128_v20, 0.0  ;;  %v262_v25 = vsel %vm141_vm1, %v221_v12, 0.0  ;;  %v185_v41 = vsel %vm141_vm1, %v131_v38, 0.0 }
  0x24   : > { %v253_v4 = vadd.f32 %v252_v59, %v251_v62  ;;  %v264_v31 = vsel %vm141_vm1, %v222_v18, 0.0  ;;  %v187_v47 = vsel %vm141_vm1, %v132_v44, 0.0  ;;  %v227_v48 = vmul.f32 %v125_v2, %v125_v2  ;;  %v135_v62 = vld [vmem:[%s457_s12 + $0xd0] sm:$0xff] }
  0x25   : > { %v158_v32 = vadd.f32 %v157_v24, %v156_v26  ;;  %v223_v24 = vmul.f32 %v121_v42, %v121_v42  ;;  %v129_v26 = vld [vmem:[%s457_s12 + $0xa0] sm:$0xff]  ;;  %v226_v42 = vmul.f32 %v124_v60, %v124_v60  ;;  %v189_v53 = vsel %vm141_vm1, %v133_v50, 0.0 }
  0x26   : > { %v255_v10 = vadd.f32 %v254_v1, %v253_v4  ;;  %v181_v29 = vsel %vm141_vm1, %v129_v26, 0.0  ;;  %v191_v59 = vsel %vm141_vm1, %v134_v56, 0.0  ;;  %v229_v60 = vmul.f32 %v127_v14, %v127_v14  ;;  %v136_v4 = vld [vmem:[%s457_s12 + $0xd8] sm:$0xff] }
  0x27   : > { %v160_v36 = vadd.f32 %v159_v27, %v158_v32  ;;  %v130_v32 = vld [vmem:[%s457_s12 + $0xa8] sm:$0xff]  ;;  %v193_v1 = vsel %vm141_vm1, %v135_v62, 0.0  ;;  %v230_v2 = vmul.f32 %v128_v20, %v128_v20  ;;  %v233_v20 = vmul.f32 %v131_v38, %v131_v38 }
  0x28   : > { %v257_v16 = vadd.f32 %v256_v7, %v255_v10  ;;  %v183_v35 = vsel %vm141_vm1, %v130_v32, 0.0  ;;  %v195_v7 = vsel %vm141_vm1, %v136_v4, 0.0  ;;  %v137_v10 = vld [vmem:[%s457_s12 + $0xe0] sm:$0xff]  ;;  %v232_v14 = vmul.f32 %v130_v32, %v130_v32 }
  0x29   : > { %v162_v43 = vadd.f32 %v161_v34, %v160_v36  ;;  %v225_v36 = vmul.f32 %v123_v54, %v123_v54  ;;  %v228_v54 = vmul.f32 %v126_v8, %v126_v8  ;;  %v231_v8 = vmul.f32 %v129_v26, %v129_v26  ;;  %v139_v26 = vld [vmem:[%s457_s12 + $0xf0] sm:$0xff] }
  0x2a   : > { %v259_v22 = vadd.f32 %v258_v13, %v257_v16  ;;  %v197_v13 = vsel %vm141_vm1, %v137_v10, 0.0  ;;  %v138_v16 = vld [vmem:[%s457_s12 + $0xe8] sm:$0xff]  ;;  %vm316_vm3 = vcmask 25600  }
  0x2b   : > { %v164_v49 = vadd.f32 %v163_v37, %v162_v43  ;;  %v266_v37 = vsel %vm141_vm1, %v223_v24, 0.0  ;;  %v268_v43 = vsel %vm141_vm1, %v224_v30, 0.0  ;;  %v234_v24 = vmul.f32 %v132_v44, %v132_v44 }
  0x2c   : > { %v261_v28 = vadd.f32 %v260_v19, %v259_v22  ;;  %v199_v19 = vsel %vm141_vm1, %v138_v16, 0.0  ;;  %v235_v30 = vmul.f32 %v133_v50, %v133_v50 }
  0x2d   : > { %v166_v55 = vadd.f32 %v165_v45, %v164_v49  ;;  %v270_v49 = vsel %vm141_vm1, %v225_v36, 0.0 }
  0x2e   : > { %v263_v34 = vadd.f32 %v262_v25, %v261_v28  ;;  %v284_v25 = vsel %vm141_vm1, %v232_v14, 0.0 }
  0x2f   : > { %v168_v61 = vadd.f32 %v167_v51, %v166_v55  ;;  %v272_v55 = vsel %vm141_vm1, %v226_v42, 0.0  ;;  %v238_v42 = vmul.f32 %v136_v4, %v136_v4 }
  0x30   : > { %v265_v40 = vadd.f32 %v264_v31, %v263_v34  ;;  %v286_v31 = vsel %vm141_vm1, %v233_v20, 0.0  ;;  %v288_v34 = vsel %vm141_vm1, %v234_v24, 0.0 }
  0x31   : > { %v170_v3 = vadd.f32 %v169_v57, %v168_v61  ;;  %v274_v61 = vsel %vm141_vm1, %v227_v48, 0.0  ;;  %v296_v50 = vsel %vm141_vm1, %v238_v42, 0.0 }
  0x32   : > { %v267_v46 = vadd.f32 %v266_v37, %v265_v40  ;;  %v290_v40 = vsel %vm141_vm1, %v235_v30, 0.0 }
  0x33   : > { %v172_v9 = vadd.f32 %v171_v63, %v170_v3  ;;  %v276_v3 = vsel %vm141_vm1, %v228_v54, 0.0 }
  0x34   : > { %v269_v52 = vadd.f32 %v268_v43, %v267_v46  ;;  %v239_v46 = vmul.f32 %v137_v10, %v137_v10 }
  0x35   : > { %v174_v15 = vadd.f32 %v173_v5, %v172_v9  ;;  %v278_v9 = vsel %vm141_vm1, %v229_v60, 0.0 }
  0x36   : > { %v271_v58 = vadd.f32 %v270_v49, %v269_v52  ;;  %v240_v49 = vmul.f32 %v138_v16, %v138_v16  ;;  %v298_v54 = vsel %vm141_vm1, %v239_v46, 0.0 }
  0x37   : > { %v176_v21 = vadd.f32 %v175_v11, %v174_v15  ;;  %v280_v15 = vsel %vm141_vm1, %v230_v2, 0.0 }
  0x38   : > { %v273_v0 = vadd.f32 %v272_v55, %v271_v58 }
  0x39   : > { %v178_v27 = vadd.f32 %v177_v17, %v176_v21  ;;  %v282_v21 = vsel %vm141_vm1, %v231_v8, 0.0 }
  0x3a   : > { %v275_v6 = vadd.f32 %v274_v61, %v273_v0 }
  0x3b   : > { %v180_v33 = vadd.f32 %v179_v23, %v178_v27 }
  0x3c   : > { %v277_v12 = vadd.f32 %v276_v3, %v275_v6 }
  0x3d   : > { %v182_v39 = vadd.f32 %v181_v29, %v180_v33  ;;  %v201_v29 = vsel %vm141_vm1, %v139_v26, 0.0  ;;  %v236_v33 = vmul.f32 %v134_v56, %v134_v56 }
  0x3e   : > { %v279_v18 = vadd.f32 %v278_v9, %v277_v12 }
  0x3f   : > { %v184_v45 = vadd.f32 %v183_v35, %v182_v39  ;;  %v140_v35 = vld [vmem:[%s457_s12 + $0xf8] sm:$0xff]  ;;  %v237_v39 = vmul.f32 %v135_v62, %v135_v62  ;;  %v292_v43 = vsel %vm141_vm1, %v236_v33, 0.0 }
  0x40   : > { %v281_v23 = vadd.f32 %v280_v15, %v279_v18  ;;  %v203_v38 = vsel %vm141_vm1, %v140_v35, 0.0  ;;  %v242_v56 = vmul.f32 %v140_v35, %v140_v35 }
  0x41   : > { %v186_v51 = vadd.f32 %v185_v41, %v184_v45 }
  0x42   : > { %v283_v28 = vadd.f32 %v282_v21, %v281_v23  ;;  %v304_v62 = vsel %vm141_vm1, %v242_v56, 0.0 }
  0x43   : > { %v188_v57 = vadd.f32 %v187_v47, %v186_v51  ;;  %v294_v47 = vsel %vm141_vm1, %v237_v39, 0.0 }
  0x44   : > { %v285_v32 = vadd.f32 %v284_v25, %v283_v28 }
  0x45   : > { %v190_v63 = vadd.f32 %v189_v53, %v188_v57  ;;  %v241_v53 = vmul.f32 %v139_v26, %v139_v26  ;;  %v300_v57 = vsel %vm141_vm1, %v240_v49, 0.0 }
  0x46   : > { %v287_v37 = vadd.f32 %v286_v31, %v285_v32 }
  0x47   : > { %v192_v5 = vadd.f32 %v191_v59, %v190_v63  ;;  %v302_v60 = vsel %vm141_vm1, %v241_v53, 0.0 }
  0x48   : > { %v289_v41 = vadd.f32 %v288_v34, %v287_v37 }
  0x49   : > { %v194_v11 = vadd.f32 %v193_v1, %v192_v5 }
  0x4a   : > { %v291_v45 = vadd.f32 %v290_v40, %v289_v41 }
  0x4b   : > { %v196_v17 = vadd.f32 %v195_v7, %v194_v11  ;;  %v312_v11 = vld [vmem:[#allocation2] sm:$0x3] }
  0x4c   : > { %v293_v48 = vadd.f32 %v292_v43, %v291_v45 }
  0x4d   : > { %v198_v22 = vadd.f32 %v197_v13, %v196_v17 }
  0x4e   : > { %v295_v52 = vadd.f32 %v294_v47, %v293_v48 }
  0x4f   : > { %v200_v27 = vadd.f32 %v199_v19, %v198_v22 }
  0x50   : > { %v297_v55 = vadd.f32 %v296_v50, %v295_v52 }
  0x51   : > { %v202_v36 = vadd.f32 %v201_v29, %v200_v27 }
  0x52   : > { %v299_v59 = vadd.f32 %v298_v54, %v297_v55 }
  0x53   : > { %v204_v44 = vadd.f32 %v203_v38, %v202_v36 }
  0x54   : > { %v301_v61 = vadd.f32 %v300_v57, %v299_v59 }
  0x55   : > { %v205_v51 = vrot.slane %v204_v44, 4 }
  0x56   : > { %v303_v0 = vadd.f32 %v302_v60, %v301_v61 }
  0x57   : > { %v206_v58 = vadd.f32 %v205_v51, %v204_v44 }
  0x58   : > { %v305_v1 = vadd.f32 %v304_v62, %v303_v0 }
  0x59   : > { %v207_v63 = vrot.slane %v206_v58, 2 }
  0x5a   : > { %v306_v3 = vrot.slane %v305_v1, 4 }
  0x5b   : > { %v208_v2 = vadd.f32 %v207_v63, %v206_v58 }
  0x5c   : > { %v307_v4 = vadd.f32 %v306_v3, %v305_v1 }
  0x5d   : > { %v209_v5 = vrot.slane %v208_v2, 1 }
  0x5e   : > { %v308_v6 = vrot.slane %v307_v4, 2 }
  0x5f   : > { %v210_v8 = vadd.f32 %v209_v5, %v208_v2 }
  0x60   : > { %v309_v7 = vadd.f32 %v308_v6, %v307_v4 }
  0x62   : > { %v310_v9 = vrot.slane %v309_v7, 1 }
  0x64   : > { %v311_v10 = vadd.f32 %v310_v9, %v309_v7 }
  0x66   : > { %v314_v12 = vsel %vm313_vm2, %v210_v8, %v311_v10 }
  0x67   : > { %v315_v13 = vadd.f32 %v314_v12, %v312_v11 }
  0x69   : > { %317 = vst.msk [vmem:[#allocation2] sm:$0x3] %vm316_vm3, %v315_v13 }
  0x6a   : > { %405 = shalt.err (!%p402_p12)
}
  0x6b   : > { %s406_s18 = scalar_lea.hbm %s583_s1, 32 }
  0x6c   : > { %p407_p13 = scmp.ne.s32.totalorder %s583_s1, %s406_s18  ;;  %p412_p2 = scmp.lt.u32.totalorder %s406_s18, %s583_s1 }
  0x6e   : > { %p408_p0 = pnand %p407_p13, %p380_p5 }
  0x70   : > { %p409_p1 = pneg %p408_p0 }
  0x72   : > { %p414_p3 = pnand %p412_p2, %p409_p1 }
  0x74   : > { %417 = shalt.err (!%p414_p3)
}
  0x75   : > { %377 = dma.vmem_to_hbm [thread:$0]  (%p380_p5), %s326_s14, 32, %s583_s1, [#allocation3]  }
  0x76   : > { %423 = dma.done.wait (%p380_p5), [#allocation3], 32  }
  0x77   : > { %425 = vsyncadd (%p380_p5), [#allocation3], 4294967264 }
  0x78 PF: > { %s12_s6 = sadd.s32 1, %s428_s6  }
  0x79   : > { %p9_p4 = scmp.ge.s32.totalorder %s12_s6, 4  }
  0x7b   :  { %11 = sbr.rel (!%p9_p4) target bundleno = 1 (0x1), region = 55 }
  0x82   :  { %338 = vsyncpa [#allocation3], 1 }
  0x83   :  { %340 = vsyncpa [#allocation3 + $0x1], 1 }

</bundles_post_ra>
